<compile_context>
chip_gen: v6e
topology: v6e:2x2x1
jax: 0.10.0
libtpu: 0.0.40
codegen_flags: <defaults>
</compile_context>

<pallas_src>
import functools

import jax
import jax.numpy as jnp
import numpy as np
from jax.experimental import pallas as pl
from jax.experimental.pallas import tpu as pltpu

# Large finite negative mask value (same idea as the reference flash kernels):
# exp() of (MASK_VALUE - row_max) underflows to exactly 0 for any valid row,
# but avoids the -inf - (-inf) = NaN hazard of the online-softmax recurrence.
MASK_VALUE = float(np.float32(-0.7 * np.finfo(np.float32).max))


def _round_up(n, m):
    return ((n + m - 1) // m) * m


def _chip_defaults():
    """Per-chip VMEM budget / scoped limit / preferred min grid steps."""
    try:
        kind = jax.devices()[0].device_kind.lower()
    except Exception:  # pragma: no cover - defensive
        kind = ""
    if "v7" in kind or "7x" in kind:
        # 64 MiB physical VMEM per TC, 2 TCs: keep tiles small, >=4 steps so
        # each core still double-buffers the next tile's DMA.
        return {"vmem_budget": 28 << 20, "vmem_limit": 48 << 20, "min_steps": 4}
    if "v6" in kind:
        return {"vmem_budget": 64 << 20, "vmem_limit": 100 << 20, "min_steps": 2}
    if "v5" in kind:
        # Default scoped limit on v5e is only 16 MiB -> must raise explicitly.
        return {"vmem_budget": 48 << 20, "vmem_limit": 96 << 20, "min_steps": 2}
    # Unknown chip: conservative.
    return {"vmem_budget": 28 << 20, "vmem_limit": 64 << 20, "min_steps": 2}


# ---------------------------------------------------------------------------
# Packed path (small S): fold batch elements into the MXU rows.
# ---------------------------------------------------------------------------
def packed_attention_kernel(x_ref, smask_ref, kmask_ref, out_ref, *, use_bf16):
    """x_ref:(1,bs,Dp) f32, smask_ref:(bs,bs) i32 (static structural mask),
    kmask_ref:(1,1,bs) i32 (key padding), out_ref:(1,bs,Dp) f32."""
    x = x_ref[0]                                   # (bs, Dp)
    cd = jnp.bfloat16 if use_bf16 else jnp.float32
    xc = x.astype(cd)

    # One dense (bs, Dp) @ (Dp, bs) matmul; cross-batch blocks are masked off
    # by the static structural mask, which also carries the per-batch diagonal.
    scores = jnp.einsum("sd,td->st", xc, xc,
                        preferred_element_type=jnp.float32)       # (bs, bs)
    masked = (smask_ref[...] != 0) | (kmask_ref[0] != 0)
    scores = jnp.where(masked, MASK_VALUE, scores)

    m = jnp.max(scores, axis=-1, keepdims=True)
    p = jnp.exp(scores - m)
    denom = jnp.sum(p, axis=-1, keepdims=True)                    # (bs, 1)
    o = jnp.einsum("st,td->sd", p.astype(cd), xc,
                   preferred_element_type=jnp.float32)            # (bs, Dp)

    r = pl.reciprocal(denom, approx=True)
    r = r * (2.0 - denom * r)          # one Newton step -> ~f32 accuracy
    out_ref[0] = (o * r).astype(out_ref.dtype)


def _pick_packed_block_b(B, S, Dp, budget, min_steps):
    divisors = [d for d in range(1, B + 1) if B % d == 0]

    def step_bytes(d):
        bs = d * S
        # x + out double-buffered, structural mask (double-buffered, i32),
        # key-pad mask, scores/p/bool intermediates, m/denom.
        return 4 * (4 * bs * Dp + 5 * bs * bs + 6 * bs)

    feas = [d for d in divisors if step_bytes(d) <= budget] or [1]
    # Prefer the smallest tile that still gives >=256 MXU rows (max grid steps
    # among the "full" tiles); otherwise keep >=min_steps grid steps if we can.
    reach = [d for d in feas if d * S >= 256]
    if reach:
        return min(reach)
    multi = [d for d in feas if B // d >= min_steps] or \
            [d for d in feas if B // d >= 2]
    return max(multi) if multi else max(feas)


def _packed_attention(x_p, mask_i32, *, B, S, Dp, cfg, use_bf16):
    block_b = _pick_packed_block_b(B, S, Dp, cfg["vmem_budget"], cfg["min_steps"])
    grid_b = B // block_b
    bs = block_b * S

    x3 = x_p.reshape(grid_b, bs, Dp)
    kmask = mask_i32.reshape(grid_b, 1, bs)

    # Static structural mask: mask cross-batch score blocks and the diagonal.
    bid = np.repeat(np.arange(block_b), S)                         # (bs,)
    struct_np = (bid[:, None] != bid[None, :]) | np.eye(bs, dtype=bool)
    struct = jnp.asarray(struct_np.astype(np.int32))               # (bs, bs)

    kernel = functools.partial(packed_attention_kernel, use_bf16=use_bf16)
    out3 = pl.pallas_call(
        kernel,
        out_shape=jax.ShapeDtypeStruct((grid_b, bs, Dp), jnp.float32),
        grid_spec=pltpu.PrefetchScalarGridSpec(
            num_scalar_prefetch=0,
            grid=(grid_b,),
            in_specs=[
                pl.BlockSpec((1, bs, Dp), lambda i: (i, 0, 0)),
                pl.BlockSpec((bs, bs), lambda i: (0, 0)),
                pl.BlockSpec((1, 1, bs), lambda i: (i, 0, 0)),
            ],
            out_specs=pl.BlockSpec((1, bs, Dp), lambda i: (i, 0, 0)),
        ),
        compiler_params=pltpu.CompilerParams(
            dimension_semantics=("parallel",),
            vmem_limit_bytes=cfg["vmem_limit"]),
    )(x3, struct, kmask)
    return out3.reshape(B, S, Dp)


# ---------------------------------------------------------------------------
# Flash path (large S): key-axis grid dimension with online softmax.
# ---------------------------------------------------------------------------
def flash_attention_kernel(xq_ref, xk_ref, kmask_ref, out_ref,
                           m_scr, l_scr, acc_scr, *, block_k, use_bf16):
    """xq_ref:(Bt,S,Dp), xk_ref:(Bt,tk,Dp), kmask_ref:(Bt,1,tk) i32,
    out_ref:(Bt,S,Dp); scratch m/l:(Bt,S,1), acc:(Bt,S,Dp)."""
    ki = pl.program_id(1)

    @pl.when(ki == 0)
    def _():
        m_scr[...] = jnp.full(m_scr.shape, MASK_VALUE, jnp.float32)
        l_scr[...] = jnp.zeros(l_scr.shape, jnp.float32)
        acc_scr[...] = jnp.zeros(acc_scr.shape, jnp.float32)

    q = xq_ref[...]                                  # (Bt, S, Dp)
    k = xk_ref[...]                                  # (Bt, tk, Dp)  (also V)
    kp = kmask_ref[...]                              # (Bt, 1, tk)

    cd = jnp.bfloat16 if use_bf16 else jnp.float32
    qc = q.astype(cd)
    kc = k.astype(cd)

    s = jnp.einsum("bsd,btd->bst", qc, kc,
                   preferred_element_type=jnp.float32)            # (Bt, S, tk)

    S, tk = s.shape[1], s.shape[2]
    # Diagonal (self) mask from a single 2-D iota pair, broadcast over batch.
    row = jax.lax.broadcasted_iota(jnp.int32, (S, tk), 0)
    col = jax.lax.broadcasted_iota(jnp.int32, (S, tk), 1)
    diag = (row == (col + ki * block_k))[None]                    # (1, S, tk)
    s = jnp.where(diag | (kp != 0), MASK_VALUE, s)

    m_prev = m_scr[...]
    m_new = jnp.maximum(m_prev, jnp.max(s, axis=-1, keepdims=True))
    alpha = jnp.exp(m_prev - m_new)
    p = jnp.exp(s - m_new)
    l_scr[...] = alpha * l_scr[...] + jnp.sum(p, axis=-1, keepdims=True)
    acc_scr[...] = alpha * acc_scr[...] + jnp.einsum(
        "bst,btd->bsd", p.astype(cd), kc, preferred_element_type=jnp.float32)
    m_scr[...] = m_new

    @pl.when(ki == pl.num_programs(1) - 1)
    def _():
        denom = l_scr[...]
        r = pl.reciprocal(denom, approx=True)
        r = r * (2.0 - denom * r)      # Newton refinement
        out_ref[...] = (acc_scr[...] * r).astype(out_ref.dtype)


def _choose_block_k(S):
    for cand in (512, 256, 128):
        if S % cand == 0:
            return cand
    return S  # fall back to a single full key tile


def _pick_flash_block_b(B, S, Dp, tk, budget, min_steps):
    # Per batch element: q + out double-buffered, acc scratch, k tile
    # double-buffered, m/l scratch, s/p/bool intermediates, mask tile.
    per_elem = 4 * (5 * S * Dp + 2 * tk * Dp + 3 * S * tk + 2 * S + 2 * tk)
    fixed = 4 * 2 * S * tk            # 2-D iota temporaries (shared over batch)
    feas = [d for d in range(1, B + 1)
            if B % d == 0 and d * per_elem + fixed <= budget] or [1]
    multi = [d for d in feas if B // d >= min_steps] or \
            [d for d in feas if B // d >= 2]
    return max(multi) if multi else max(feas)


def _flash_attention(x_p, mask_i32, *, B, S, Dp, cfg, use_bf16, block_k=None):
    tk = block_k if (block_k is not None and S % block_k == 0) else _choose_block_k(S)
    block_b = _pick_flash_block_b(B, S, Dp, tk, cfg["vmem_budget"], cfg["min_steps"])
    grid_b = B // block_b
    num_k = S // tk
    kmask = mask_i32.reshape(B, 1, S)

    kernel = functools.partial(flash_attention_kernel, block_k=tk, use_bf16=use_bf16)
    return pl.pallas_call(
        kernel,
        out_shape=jax.ShapeDtypeStruct((B, S, Dp), jnp.float32),
        grid_spec=pltpu.PrefetchScalarGridSpec(
            num_scalar_prefetch=0,
            grid=(grid_b, num_k),
            in_specs=[
                pl.BlockSpec((block_b, S, Dp), lambda bi, ki: (bi, 0, 0)),
                pl.BlockSpec((block_b, tk, Dp), lambda bi, ki: (bi, ki, 0)),
                pl.BlockSpec((block_b, 1, tk), lambda bi, ki: (bi, 0, ki)),
            ],
            out_specs=pl.BlockSpec((block_b, S, Dp), lambda bi, ki: (bi, 0, 0)),
            scratch_shapes=[
                pltpu.VMEM((block_b, S, 1), jnp.float32),   # running max
                pltpu.VMEM((block_b, S, 1), jnp.float32),   # running denom
                pltpu.VMEM((block_b, S, Dp), jnp.float32),  # output accumulator
            ],
        ),
        compiler_params=pltpu.CompilerParams(
            dimension_semantics=("parallel", "arbitrary"),
            vmem_limit_bytes=cfg["vmem_limit"]),
    )(x_p, x_p, kmask)


# ---------------------------------------------------------------------------
# Public wrapper
# ---------------------------------------------------------------------------
def self_attention(x, x_mask, *, use_bf16=False, block_k=None):
    """x: (B,S,D) float, x_mask: (B,S) bool -> weighted_x (B,S,D) f32."""
    B, S, D = x.shape
    x = x.astype(jnp.float32)
    mask_i32 = x_mask.astype(jnp.int32)

    # Lane-dense feature dim: pad D up to a multiple of 128 (zeros don't change
    # scores, and padded output columns are exactly zero -> slice them off).
    Dp = _round_up(max(D, 128), 128)
    x_p = jnp.pad(x, ((0, 0), (0, 0), (0, Dp - D))) if Dp != D else x

    cfg = _chip_defaults()
    if S <= 128:
        out = _packed_attention(x_p, mask_i32, B=B, S=S, Dp=Dp, cfg=cfg,
                                use_bf16=use_bf16)
    else:
        out = _flash_attention(x_p, mask_i32, B=B, S=S, Dp=Dp, cfg=cfg,
                               use_bf16=use_bf16, block_k=block_k)
    return out[..., :D] if Dp != D else out


def reference(x, x_mask):
    """Pure-JAX mirror of the PyTorch forward (returned value only)."""
    hi = jax.lax.Precision.HIGHEST
    scores = jnp.einsum("bsd,btd->bst", x, x, precision=hi)
    scores = jnp.where(x_mask[:, None, :], -jnp.inf, scores)
    eye = jnp.eye(x.shape[1], dtype=bool)
    scores = jnp.where(eye[None], -jnp.inf, scores)
    att = jax.nn.softmax(scores, axis=-1)
    return jnp.einsum("bst,btd->bsd", att, x, precision=hi)


if __name__ == "__main__":
    key = jax.random.PRNGKey(0)
    k1, k2, k3, k4 = jax.random.split(key, 4)

    # Small module-consistent shapes (packed, batch-folded path).
    B, S, D = 2, 8, 32
    x = jax.random.normal(k1, (B, S, D), dtype=jnp.float32)
    x_mask = jax.random.bernoulli(k2, 0.3, (B, S))
    # Guarantee >=1 valid non-diagonal key per query row (fully-masked rows
    # would NaN in the reference too).
    x_mask = x_mask.at[:, :2].set(False)

    out = jax.block_until_ready(self_attention(x, x_mask))
    np.testing.assert_allclose(np.asarray(out), np.asarray(reference(x, x_mask)),
                               rtol=2e-5, atol=2e-5)

    # Larger-S shapes exercising the key-tiled online-softmax path.
    B2, S2, D2 = 2, 256, 64
    x2 = jax.random.normal(k3, (B2, S2, D2), dtype=jnp.float32)
    m2 = jax.random.bernoulli(k4, 0.3, (B2, S2))
    m2 = m2.at[:, :2].set(False)

    out2 = jax.block_until_ready(self_attention(x2, m2, block_k=128))
    np.testing.assert_allclose(np.asarray(out2), np.asarray(reference(x2, m2)),
                               rtol=2e-5, atol=2e-5)

    print("KERNEL_OK")
</pallas_src>

<mosaic_0001>
module attributes {stable_mosaic.version = 11 : i64} {
  func.func @packed_attention_kernel(%arg0: i32, %arg1: memref<1x8x128xf32, #tpu.memory_space<vmem>>, %arg2: memref<8x8xi32, #tpu.memory_space<vmem>>, %arg3: memref<1x1x8xi32, #tpu.memory_space<vmem>>, %arg4: memref<1x8x128xf32, #tpu.memory_space<vmem>>) attributes {dimension_semantics = [#tpu.dimension_semantics<parallel>], iteration_bounds = array<i64: 2>, scalar_prefetch = 0 : i64, scratch_operands = 0 : i64, tpu.core_type = #tpu.core_type<tc>, window_params = [{transform_indices = @transform_0, window_bounds = array<i64: 1, 8, 128>}, {pipeline_mode = #tpu.pipeline_mode<synchronous>, transform_indices = @transform_1, window_bounds = array<i64: 8, 8>}, {transform_indices = @transform_2, window_bounds = array<i64: 1, 1, 8>}, {transform_indices = @transform_3, window_bounds = array<i64: 1, 8, 128>}]} {
    %c0 = arith.constant 0 : index
    %c0_0 = arith.constant 0 : index
    %c0_1 = arith.constant 0 : index
    %0 = vector.load %arg1[%c0, %c0_0, %c0_1] : memref<1x8x128xf32, #tpu.memory_space<vmem>>, vector<1x8x128xf32>
    %1 = vector.shape_cast %0 : vector<1x8x128xf32> to vector<8x128xf32>
    "tpu.trace_start"() <{level = 10 : i32, message = "sd,td->st"}> : () -> ()
    %cst = arith.constant dense<0.000000e+00> : vector<8x8xf32>
    %2 = tpu.matmul %1, %1, %cst {dimension_numbers = #tpu.dot_dimension_numbers<[1], [1], [0], [0], [0, 0, 1, 0], [], []>} : vector<8x128xf32>, vector<8x128xf32>, vector<8x8xf32> -> vector<8x8xf32>
    "tpu.trace_stop"() : () -> ()
    %c0_2 = arith.constant 0 : index
    %c0_3 = arith.constant 0 : index
    %3 = vector.load %arg2[%c0_2, %c0_3] : memref<8x8xi32, #tpu.memory_space<vmem>>, vector<8x8xi32>
    %c0_i32 = arith.constant 0 : i32
    %4 = vector.broadcast %c0_i32 : i32 to vector<8x8xi32>
    %5 = arith.cmpi ne, %3, %4 : vector<8x8xi32>
    %c0_4 = arith.constant 0 : index
    %c0_5 = arith.constant 0 : index
    %c0_6 = arith.constant 0 : index
    %6 = vector.load %arg3[%c0_4, %c0_5, %c0_6] : memref<1x1x8xi32, #tpu.memory_space<vmem>>, vector<1x1x8xi32>
    %7 = vector.shape_cast %6 : vector<1x1x8xi32> to vector<1x8xi32>
    %c0_i32_7 = arith.constant 0 : i32
    %8 = vector.broadcast %c0_i32_7 : i32 to vector<1x8xi32>
    %9 = arith.cmpi ne, %7, %8 : vector<1x8xi32>
    %10 = vector.broadcast %9 : vector<1x8xi1> to vector<8x8xi1>
    %11 = arith.ori %5, %10 : vector<8x8xi1>
    %cst_8 = arith.constant -2.38197633E+38 : f32
    %12 = vector.broadcast %cst_8 : f32 to vector<8x8xf32>
    %13 = arith.select %11, %12, %2 : vector<8x8xi1>, vector<8x8xf32>
    %cst_9 = arith.constant dense<0xFF800000> : vector<8xf32>
    %14 = vector.multi_reduction <maximumf>, %13, %cst_9 [1] : vector<8x8xf32> to vector<8xf32>
    %15 = vector.shape_cast %14 : vector<8xf32> to vector<8x1xf32>
    %16 = vector.broadcast %15 : vector<8x1xf32> to vector<8x8xf32>
    %17 = arith.subf %13, %16 : vector<8x8xf32>
    %18 = math.exp %17 : vector<8x8xf32>
    %cst_10 = arith.constant dense<0.000000e+00> : vector<8xf32>
    %19 = vector.multi_reduction <add>, %18, %cst_10 [1] : vector<8x8xf32> to vector<8xf32>
    %20 = vector.shape_cast %19 : vector<8xf32> to vector<8x1xf32>
    "tpu.trace_start"() <{level = 10 : i32, message = "st,td->sd"}> : () -> ()
    %cst_11 = arith.constant dense<0.000000e+00> : vector<8x128xf32>
    %21 = tpu.matmul %18, %1, %cst_11 {dimension_numbers = #tpu.dot_dimension_numbers<[1], [0], [0], [1], [0, 0, 1, 1], [], []>} : vector<8x8xf32>, vector<8x128xf32>, vector<8x128xf32> -> vector<8x128xf32>
    "tpu.trace_stop"() : () -> ()
    %22 = tpu.reciprocal %20 {approx = true} : vector<8x1xf32> -> vector<8x1xf32>
    %23 = arith.mulf %20, %22 : vector<8x1xf32>
    %cst_12 = arith.constant 2.000000e+00 : f32
    %24 = vector.broadcast %cst_12 : f32 to vector<8x1xf32>
    %25 = arith.subf %24, %23 : vector<8x1xf32>
    %26 = arith.mulf %22, %25 : vector<8x1xf32>
    %27 = vector.broadcast %26 : vector<8x1xf32> to vector<8x128xf32>
    %28 = arith.mulf %21, %27 : vector<8x128xf32>
    %c0_13 = arith.constant 0 : index
    %c0_14 = arith.constant 0 : index
    %c0_15 = arith.constant 0 : index
    %29 = vector.load %arg4[%c0_13, %c0_14, %c0_15] : memref<1x8x128xf32, #tpu.memory_space<vmem>>, vector<1x8x128xf32>
    %30 = vector.shape_cast %29 : vector<1x8x128xf32> to vector<8x128xf32>
    %31 = vector.shape_cast %28 : vector<8x128xf32> to vector<1x8x128xf32>
    tpu.vector_store %arg4[%c0_13, %c0_14, %c0_15], %31 {strides = array<i32>} : memref<1x8x128xf32, #tpu.memory_space<vmem>>, vector<1x8x128xf32>,
    return
  }
  func.func @transform_0(%arg0: i32) -> (i32, i32, i32) {
    %c0_i32 = arith.constant 0 : i32
    %c0_i32_0 = arith.constant 0 : i32
    %c0_i32_1 = arith.constant 0 : i32
    return %arg0, %c0_i32, %c0_i32_0 : i32, i32, i32
  }
  func.func @transform_1(%arg0: i32) -> (i32, i32) {
    %c0_i32 = arith.constant 0 : i32
    %c0_i32_0 = arith.constant 0 : i32
    %c0_i32_1 = arith.constant 0 : i32
    return %c0_i32, %c0_i32_0 : i32, i32
  }
  func.func @transform_2(%arg0: i32) -> (i32, i32, i32) {
    %c0_i32 = arith.constant 0 : i32
    %c0_i32_0 = arith.constant 0 : i32
    %c0_i32_1 = arith.constant 0 : i32
    return %arg0, %c0_i32, %c0_i32_0 : i32, i32, i32
  }
  func.func @transform_3(%arg0: i32) -> (i32, i32, i32) {
    %c0_i32 = arith.constant 0 : i32
    %c0_i32_0 = arith.constant 0 : i32
    %c0_i32_1 = arith.constant 0 : i32
    return %arg0, %c0_i32, %c0_i32_0 : i32, i32, i32
  }
}

</mosaic_0001>

<bundles_post_ra>
// kernel: tpu_custom_call.1
= control target key start
LH: loop header
LB: loop body
LE: loop exit
PB: predicated region body
PF: predicated region fallthrough
CT: control target
= control target key end

     0   :  { %8 = vsyncpa [#allocation3], 0  ;;  %s912_s0 = inlined_call_operand.hbm [shape: f32[2,8,128], index: 0, kind: input, shape index: {}]   ;;  %s913_s1 = inlined_call_operand.hbm [shape: s32[8,8], index: 1, kind: input, shape index: {}]   ;;  %s914_s2 = inlined_call_operand.vmem [shape: s32[2,1,8], index: 2, kind: input, shape index: {}]   ;;  %s915_s3 = inlined_call_operand.hbm [shape: f32[2,8,128], index: 3, kind: output, shape index: {}]  }
   0x1   :  { %10 = vsyncpa [#allocation3 + $0x1], 0 }
   0x2   :  { %11 = vsyncpa [#allocation6], 0 }
   0x3   :  { %12 = vsyncpa [#allocation4], 0 }
   0x4   :  { %14 = vsyncpa [#allocation4 + $0x1], 0  ;;  %s731_s12 = smov 0   ;;  %s733_s13 = smov 0  }
   0x5   :  { %s735_s14 = smov 0   ;;  %s737_s15 = smov 0  }
   0x6 LB: > { %s752_s16 = sadd.s32 4294967295, %s703_s15   ;;  %s488_s17 = sadd.s32 4294967294, %s703_s15   ;;  %s703_s15 = sphi %s737_s15, %s938_s15   ;;  %s699_s14 = sphi %s735_s14, %s937_s14   ;;  %s695_s13 = sphi %s733_s13, %s936_s13   ;;  %s691_s12 = sphi %s731_s12, %s935_s12  }
   0x7   : > { %p40_p0 = scmp.ne.s32.totalorder %s695_s13, %s691_s12  ;;  %p916_p1 = scmp.eq.s32.totalorder %s752_s16, 0 }
   0x8   : > { %p117_p3 = scmp.eq.s32.totalorder %s488_s17, 1  ;;  %p489_p5 = scmp.ge.s32.totalorder %s703_s15, 1 }
   0x9   : > { %p761_p4 = por %p916_p1, %p40_p0  ;;  %p124_p7 = scmp.lt.s32.totalorder %s703_s15, 3 }
   0xa   : > { %p766_p6 = por %p117_p3, %p40_p0  ;;  %s705_s21 = smov [#allocation5]  }
   0xb   : > { %s920_s18 = scalar_select %p761_p4, 1, 0 }
   0xc   : > { %s921_s19 = scalar_select %p766_p6, 1, 0 }
   0xd   : > { %p771_p8 = pnand %p489_p5, %p124_p7  ;;  %s137_s22 = sshll.u32 %s705_s21, 4  ;;  %s138_s22 = int_to_ptr.vmem [resolvable:$true] %s137_s22 }
   0xe   : > { %s779_s23 = sadd.s32 1, %s703_s15   ;;  %s27_s27 = sadd.s32 1, %s699_s14 }
   0xf   : > { %s922_s20 = scalar_select %p771_p8, 1, 0 }
  0x10   : > { %p525_p10 = pneg %p771_p8  ;;  %s24_s25 = ssub.s32 %s703_s15, %s779_s23 }
  0x11   : > { %p789_p12 = scmp.eq.s32.totalorder %s24_s25, 0  ;;  %p34_p13 = scmp.ne.s32.totalorder %s699_s14, %s695_s13 }
  0x12   : > { %p783_p11 = pnand %p525_p10, %p916_p1  ;;  %s592_s28 = scalar_lea.vmem %s138_s22, 128 }
  0x13   : > { %p593_p3 = scmp.ne.s32.totalorder %s138_s22, %s592_s28  ;;  %p600_p9 = scmp.lt.s32.totalorder %s138_s22, %s138_s22 }
  0x14   : > { %p583_p0 = pneg %p783_p11  ;;  %p601_p2 = scmp.lt.s32.totalorder %s592_s28, %s592_s28 }
  0x16   : > { %p595_p5 = pnand %p593_p3, %p583_p0  ;;  %p602_p10 = por %p601_p2, %p600_p9 }
  0x18   : > { %p596_p7 = pneg %p595_p5 }
  0x1a   : > { %p603_p1 = pnand %p602_p10, %p596_p7 }
  0x1c   : > { %606 = shalt.err (!%p603_p1)
}
  0x1d   : > { %528 = dma.hbm_to_vmem [thread:$0]  (!%p783_p11), %s913_s1, 128, %s138_s22, [#allocation6]  }
  0x1e   : > { %s806_s4 = scalar_select %p789_p12, %s699_s14, %s27_s27  }
  0x1f   : > { %p35_p1 = scmp.eq.s32.totalorder %s703_s15, 0  ;;  %p925_p2 = scmp.eq.s32.totalorder %s752_s16, 1 }
  0x20   : > { %p538_p0 = scmp.lt.s32.totalorder %s703_s15, 2  ;;  %s148_s6 = sand.u32 1, %s699_s14  }
  0x21   : > { %p814_p9 = por %p925_p2, %p34_p13  ;;  %p36_p3 = por %p35_p1, %p34_p13 }
  0x22   : > { %s492_s7 = sshll.u32 %s148_s6, 3  ;;  %s493_s8 = sshll.u32 %s703_s15, 7 }
  0x23   : > { %s926_s5 = scalar_select %p814_p9, 1, 0 }
  0x24   : > { %s827_s11 = scalar_lea.hbm %s912_s0, %s493_s8  ;;  %s152_s17 = scalar_lea.vmem [#allocation2], %s492_s7 }
  0x25   : > { %s159_s21 = sshll.u32 %s152_s17, 4  ;;  %p829_p11 = pnand %p538_p0, %p36_p3  ;;  %s160_s21 = int_to_ptr.vmem [resolvable:$true] %s159_s21 }
  0x26   : > { %s149_s24 = scalar_lea.sflag [#allocation3], %s148_s6  ;;  %s607_s25 = scalar_lea.hbm %s827_s11, 128 }
  0x27   : > { %p608_p12 = scmp.ne.s32.totalorder %s827_s11, %s607_s25  ;;  %p609_p13 = pneg %p829_p11 }
  0x28   : > { %s612_s28 = scalar_lea.hbm %s912_s0, 256  ;;  %p613_p10 = scmp.lt.s32.totalorder %s827_s11, %s912_s0 }
  0x29   : > { %p610_p5 = pnand %p609_p13, %p608_p12  ;;  %p614_p1 = scmp.lt.s32.totalorder %s612_s28, %s607_s25 }
  0x2b   : > { %p611_p7 = pneg %p610_p5  ;;  %p615_p2 = por %p614_p1, %p613_p10 }
  0x2d   : > { %p616_p0 = pnand %p615_p2, %p611_p7 }
  0x2f   : > { %619 = shalt.err (!%p616_p0)
}
  0x30   : > { %s620_s7 = scalar_lea.vmem %s160_s21, 128  ;;  %s706_s6 = smov [#allocation2]  }
  0x31   : > { %p621_p3 = scmp.ne.s32.totalorder %s160_s21, %s620_s7  ;;  %s625_s8 = sshll.u32 %s706_s6, 4  ;;  %s626_s8 = int_to_ptr.vmem [resolvable:$false] %s625_s8 }
  0x32   : > { %s627_s9 = scalar_lea.vmem %s626_s8, 256  ;;  %p628_p12 = scmp.lt.s32.totalorder %s160_s21, %s626_s8 }
  0x33   : > { %p623_p6 = pnand %p621_p3, %p609_p13  ;;  %p629_p5 = scmp.lt.s32.totalorder %s627_s9, %s620_s7 }
  0x35   : > { %p624_p9 = pneg %p623_p6  ;;  %p630_p4 = por %p629_p5, %p628_p12 }
  0x37   : > { %p631_p8 = pnand %p630_p4, %p624_p9 }
  0x39   : > { %634 = shalt.err (!%p631_p8)
}
  0x3a   : > { %532 = dma.hbm_to_vmem [thread:$0]  (!%p829_p11), %s827_s11, 128, %s160_s21, %s149_s24  }
  0x3b   : > { %p928_p7 = scmp.ne.s32.totalorder %s922_s20, 0 }
  0x3c   : > { %s850_s10 = sand.u32 (!%p928_p7), 1, %s695_s13   ;;  %p929_p4 = scmp.ne.s32.totalorder (!%p928_p7), %s920_s18, 0 }
  0x3d   : > { %174 = sbr.rel (%p928_p7) target bundleno = 635 (0x27b), region = 32  ;;  %s495_s17 = sshll.u32 (!%p928_p7), %s850_s10, 3 }
  0x3e   : > { %s177_s25 = scalar_lea.sflag (!%p928_p7), [#allocation3], %s850_s10  ;;  %s180_s26 = scalar_lea.vmem (!%p928_p7), [#allocation2], %s495_s17 }
  0x42   : > { %678 = dma.done.wait (%p929_p4), %s177_s25, 128  }
  0x43   : > { %680 = vsyncadd (%p929_p4), %s177_s25, 4294967168  ;;  %p930_p6 = scmp.eq.s32.totalorder %s752_s16, 0 }
  0x45   : > { %682 = dma.done.wait (%p930_p6), [#allocation6], 128   ;;  %p931_p8 = pmov %p930_p6 }
  0x46   : > { %v707_v0 = vmov 0.0   ;;  %vm708_vm0 = vmmov 0   ;;  %v213_v1 = vld [vmem:[%s180_s26] sm:$0xff]  ;;  %p210_p9 = scmp.lt.s32.totalorder %s752_s16, 1  ;;  %v289_v2 = vlaneseq  ;;  %v709_v6 = vmov 0   ;;  %v284_v9 = vld [vmem:[#allocation5] sm:$0xff] }
  0x47   : > { %684 = vsyncadd (%p931_p8), [#allocation6], 4294967168  ;;  %507 = vmatprep.subr.mxu0 %v707_v0  ;;  %509 = vmatprep.mubr.msk.f32.mxu0 %vm708_vm0, %v707_v0  ;;  %vm285_vm2 = vcmp.ne.s32.totalorder %v284_v9, 0  ;;  %vm296_vm5 = vcmask 64512   ;;  %s500_s22 = sshll.u32 %s752_s16, 7  ;;  %s209_s24 = scalar_lea.vmem [#allocation7], %s495_s17 }
  0x48   : > { %512 = vmatprep.subr.mxu1 %v707_v0  ;;  %514 = vmatprep.mubr.msk.f32.mxu1 %vm708_vm0, %v707_v0  ;;  %s211_s18 = scalar_select %p210_p9, %s752_s16, 1  ;;  %v290_v4 = vshrl.u32 %v289_v2, 7 }
  0x49   : > { %508 = vmatpush3.xpose.msra.mxu0 %v213_v1  ;;  %513 = vmatpush3.msra.mxu1 %v213_v1  ;;  %s399_s27 = sshll.u32 %s209_s24, 4  ;;  %s875_s30 = scalar_lea.hbm %s915_s3, %s500_s22  ;;  %s400_s27 = int_to_ptr.vmem [resolvable:$true] %s399_s27 }
  0x4a   : > { %s212_s21 = scalar_lea.vmem %s914_s2, %s211_s18  ;;  %v291_v5 = vsub.s32 0, %v290_v4  ;;  %s386_s7 = scalar_lea.sflag [#allocation4], %s850_s10 }
  0x4b   : > { %v286_v3 = vld [vmem:[%s212_s21] sm:$0x1]  ;;  %s635_s6 = scalar_lea.vmem %s400_s27, 128  ;;  %p932_p13 = scmp.ne.s32.totalorder %s926_s5, 0 }
  0x4c   : > { %510 = vmatmul.mubr.f32.vlgmr.msra.gmra.mxu0 %v213_v1  ;;  %vm287_vm1 = vcmp.ne.s32.totalorder %v286_v3, 0  ;;  %p636_p11 = scmp.ne.s32.totalorder %s400_s27, %s635_s6  ;;  %s710_s16 = smov [#allocation7]  }
  0x4d   : > { %v288_v7 = vsel %vm287_vm1, 1, %v709_v6  ;;  %s639_s8 = sshll.u32 %s710_s16, 4  ;;  %s640_s8 = int_to_ptr.vmem [resolvable:$false] %s639_s8 }
  0x4e   : > { %v292_v8 = vrot.slane %v288_v7, %v291_v5  ;;  %p637_p10 = pnand %p636_p11, %p932_p13  ;;  %s641_s9 = scalar_lea.vmem %s640_s8, 256 }
  0x4f   : > { %p642_p2 = scmp.lt.s32.totalorder %s400_s27, %s640_s8  ;;  %p643_p0 = scmp.lt.s32.totalorder %s641_s9, %s635_s6 }
  0x50   : > { %vm293_vm3 = vcmp.eq.s32.totalorder %v292_v8, 1  ;;  %p638_p1 = pneg %p637_p10 }
  0x51   : > { %vm294_vm4 = vmor %vm285_vm2, %vm293_vm3  ;;  %p644_p3 = por %p643_p0, %p642_p2 }
  0x53   : > { %p645_p12 = pnand %p644_p3, %p638_p1 }
 0x10c   : > { %v280_v10 = vpop.f32.mrf.mxu0 }
 0x10d   : > { %v295_v11 = vsel %vm294_vm4, -2.3819763e+38, %v280_v10 }
 0x10e   : > { %v511_v12 = vpop.f32.mrf.mxu0  ;;  %v297_v13 = vsel %vm296_vm5, %v295_v11, -inf }
 0x10f   : > { %298 = vmax.xlane.f32.xlu0 %v297_v13 }
 0x198   : > { %v299_v14 = vpop.xlane.xlu0 %298 }
 0x199   : > { %v300_v15 = vsub.f32 %v295_v11, %v299_v14 }
 0x19b   : > { %v301_v16 = vmul.f32 1.442695, %v300_v15 }
 0x19d   : > { %577 = vpow2.f32 %v301_v16 }
 0x1aa   : > { %v578_v17 = vpop.eup %577 }
 0x1ab   : > { %515 = vmatmul.mubr.msk.f32.vlgmr.msra.gmra.mxu1 %vm296_vm5, %v578_v17  ;;  %v303_v18 = vsel %vm296_vm5, %v578_v17, 0.0 }
 0x1ac   : > { %304 = vadd.xlane.f32.xlu0 %v303_v18 }
 0x235   : > { %v305_v19 = vpop.xlane.xlu0 %304 }
 0x236   : > { %579 = vrcp.f32 %v305_v19 }
 0x243   : > { %v580_v20 = vpop.eup %579 }
 0x244   : > { %v380_v21 = vmul.f32 %v580_v20, %v305_v19 }
 0x246   : > { %v381_v22 = vsub.f32 2.0, %v380_v21 }
 0x248   : > { %v382_v23 = vmul.f32 %v580_v20, %v381_v22 }
 0x26b   : > { %v375_v24 = vpop.f32.mrf.mxu1 }
 0x26c   : > { %v383_v25 = vmul.f32 %v382_v23, %v375_v24 }
 0x26d   : > { %v516_v26 = vpop.f32.mrf.mxu1 }
 0x26e   : > { %384 = vst [vmem:[%s209_s24] sm:$0xff] %v383_v25 }
 0x26f   : > { %648 = shalt.err (!%p645_p12)
}
 0x270   : > { %s649_s17 = scalar_lea.hbm %s875_s30, 128  ;;  %s653_s26 = scalar_lea.hbm %s915_s3, 256 }
 0x271   : > { %p650_p5 = scmp.ne.s32.totalorder %s875_s30, %s649_s17  ;;  %p654_p6 = scmp.lt.s32.totalorder %s875_s30, %s915_s3 }
 0x272   : > { %p655_p8 = scmp.lt.s32.totalorder %s653_s26, %s649_s17 }
 0x273   : > { %p651_p7 = pnand %p650_p5, %p932_p13 }
 0x274   : > { %p656_p9 = por %p655_p8, %p654_p6 }
 0x275   : > { %p652_p4 = pneg %p651_p7 }
 0x277   : > { %p657_p11 = pnand %p656_p9, %p652_p4 }
 0x279   : > { %660 = shalt.err (!%p657_p11)
}
 0x27a   : > { %523 = dma.vmem_to_hbm [thread:$0]  (%p932_p13), %s400_s27, 128, %s875_s30, %s386_s7  }
 0x27b PF: > { %s411_s11 = sand.u32 1, %s691_s12   ;;  %p933_p10 = scmp.ne.s32.totalorder %s921_s19, 0 }
 0x27c   : > { %p934_p1 = scmp.ge.s32.totalorder %s703_s15, 2  ;;  %s412_s21 = scalar_lea.sflag [#allocation4], %s411_s11 }
 0x27e   : > { %p534_p2 = pnand %p934_p1, %p933_p10 }
 0x280   : > { %p535_p0 = pneg %p534_p2 }
 0x282   : > { %686 = dma.done.wait (%p535_p0), %s412_s21, 128  }
 0x283   : > { %688 = vsyncadd (%p535_p0), %s412_s21, 4294967168  ;;  %p17_p3 = scmp.ge.s32.totalorder %s779_s23, 4   ;;  %s935_s12 = smov %s695_s13 }
 0x284   : > { %s936_s13 = smov %s699_s14  ;;  %s937_s14 = smov %s806_s4 }
 0x285   : > { %s938_s15 = smov %s779_s23  ;;  %19 = sbr.rel (!%p17_p3) target bundleno = 6 (0x6), region = 84 }
 0x28a   :  { %417 = vsyncpa [#allocation3], 1 }
 0x28b   :  { %419 = vsyncpa [#allocation3 + $0x1], 1 }
 0x28c   :  { %420 = vsyncpa [#allocation6], 1 }
 0x28d   :  { %421 = vsyncpa [#allocation4], 1 }
 0x28e   :  { %423 = vsyncpa [#allocation4 + $0x1], 1 }

</bundles_post_ra>
